<compile_context>
chip_gen: v5e
topology: v5e:2x2
jax: 0.10.0
libtpu: 0.0.40
codegen_flags: <defaults>
</compile_context>

<pallas_src>
import jax
import jax.numpy as jnp
from jax.experimental import pallas as pl
from jax.experimental.pallas import tpu as pltpu

_LN_EPS = 1e-5


def _prenorm2_ln_kernel(x_ref, x2_ref, w_ref, b_ref, o_ref, o2_ref):
    """Shared-affine LayerNorm over the last dim of two (TN, D) row blocks."""
    w = w_ref[...].astype(jnp.float32)          # (1, D) — broadcasts against (TN, D)
    b = b_ref[...].astype(jnp.float32)          # (1, D)
    inv_d = 1.0 / x_ref.shape[-1]

    def _norm_one(in_ref, out_ref):
        x = in_ref[...].astype(jnp.float32)                  # (TN, D)
        # Two-pass statistics: x is VMEM-resident, so the second pass is free
        # bandwidth-wise and numerically robust (var >= 0 by construction).
        mean = jnp.sum(x, axis=-1, keepdims=True) * inv_d    # (TN, 1)
        xc = x - mean
        var = jnp.sum(xc * xc, axis=-1, keepdims=True) * inv_d
        inv = jax.lax.rsqrt(var + _LN_EPS)                   # EUP slot — effectively free
        out_ref[...] = ((xc * inv) * w + b).astype(out_ref.dtype)

    _norm_one(x_ref, o_ref)
    _norm_one(x2_ref, o2_ref)


def _choose_tile_rows(total_rows, D, itemsize):
    """Row tile: ~2 MiB per (TN, D) input tile, sublane-aligned, capped at total_rows.

    2 MiB/stream keeps the double-buffered 2-in/2-out working set (+ f32 upcast
    temps for bf16 inputs) well inside v7x's 64 MiB-per-TC VMEM while being large
    enough to hit the ~85% HBM-roofline regime on v5e/v6e.
    """
    sublane = 8 if itemsize >= 4 else (16 if itemsize == 2 else 32)
    target_rows = max(sublane, (2 << 20) // max(1, D * itemsize))
    tn = (target_rows // sublane) * sublane
    tn = max(sublane, min(tn, total_rows))
    if tn >= total_rows:
        return total_rows              # full-extent block is always a legal BlockSpec dim
    return tn


def pallas_prenorm2_layernorm(x, x2, weight, bias, out_dtype=None):
    """Fused shared-affine LayerNorm of x and x2 over the last dim (one pallas_call).

    out_dtype: dtype of the normalized outputs. Defaults to the input dtype
    (PyTorch semantics); pass jnp.bfloat16 when `fn` is an MXU-bound matmul to
    halve the write-side HBM traffic of this memory-bound stage.
    """
    assert x.shape == x2.shape, "x and x2 must have the same shape"
    *lead, D = x.shape
    # Lane-dense feature dim (multiple of 128) keeps output stores unmasked; any
    # other D is still correct, just slower (masked partial stores).
    rows = 1
    for s in lead:
        rows *= s
    out_dtype = x.dtype if out_dtype is None else out_dtype

    # Free, contiguous reshape: (B, N, D) -> (B*N, D). One fat parallel row axis.
    xr = x.reshape(rows, D)
    x2r = x2.reshape(rows, D)
    w2 = weight.reshape(1, D)
    b2 = bias.reshape(1, D)

    tn = _choose_tile_rows(rows, D, x.dtype.itemsize)
    grid = (pl.cdiv(rows, tn),)

    data_spec = pl.BlockSpec((tn, D), lambda i: (i, 0))
    param_spec = pl.BlockSpec((1, D), lambda i: (0, 0))

    nx, nx2 = pl.pallas_call(
        _prenorm2_ln_kernel,
        out_shape=(
            jax.ShapeDtypeStruct((rows, D), out_dtype),
            jax.ShapeDtypeStruct((rows, D), out_dtype),
        ),
        grid_spec=pltpu.PrefetchScalarGridSpec(
            num_scalar_prefetch=0,
            grid=grid,
            in_specs=[data_spec, data_spec, param_spec, param_spec],
            out_specs=[data_spec, data_spec],
        ),
        compiler_params=pltpu.CompilerParams(
            dimension_semantics=("parallel",),
            vmem_limit_bytes=48 * 1024 * 1024,
        ),
    )(xr, x2r, w2, b2)
    return nx.reshape(*lead, D), nx2.reshape(*lead, D)


def prenorm2_forward(x, x2, weight, bias, fn, out_dtype=None, **kwargs):
    """PreNorm2.forward: fn(norm(x), norm(x2), **kwargs) with a shared LayerNorm."""
    nx, nx2 = pallas_prenorm2_layernorm(x, x2, weight, bias, out_dtype=out_dtype)
    return fn(nx, nx2, **kwargs)


# `fn` in the original module is an arbitrary user-provided callable (e.g.
# cross-attention in BiT); a simple deterministic placeholder is used here.
def _default_fn(a, b):
    return a + b


def _reference_layernorm(x, weight, bias, eps=_LN_EPS):
    xf = x.astype(jnp.float32)
    mean = jnp.mean(xf, axis=-1, keepdims=True)
    var = jnp.mean((xf - mean) ** 2, axis=-1, keepdims=True)
    y = (xf - mean) * jax.lax.rsqrt(var + eps)
    return (y * weight + bias).astype(x.dtype)


if __name__ == "__main__":
    key = jax.random.PRNGKey(0)
    k1, k2, k3, k4 = jax.random.split(key, 4)

    # Small but lane-dense shapes: batch=2, seq=16, hidden=128 (multiple of 128).
    B, N, D = 2, 16, 128

    x = jax.random.normal(k1, (B, N, D), dtype=jnp.float32)
    x2 = jax.random.normal(k2, (B, N, D), dtype=jnp.float32)

    # LayerNorm params (init ~ ones / zeros, perturbed so the affine is exercised).
    weight = jnp.ones((D,), jnp.float32) + 0.01 * jax.random.normal(k3, (D,), jnp.float32)
    bias = 0.01 * jax.random.normal(k4, (D,), jnp.float32)

    out = prenorm2_forward(x, x2, weight, bias, _default_fn)
    out = jax.block_until_ready(out)

    # Correctness check against a pure-JAX reference (same default f32 output dtype).
    ref = _default_fn(_reference_layernorm(x, weight, bias),
                      _reference_layernorm(x2, weight, bias))
    assert out.shape == (B, N, D)
    assert jnp.allclose(out, ref, atol=1e-4, rtol=1e-4), "mismatch vs reference"

    print("KERNEL_OK")
</pallas_src>

<mosaic_0001>
module attributes {stable_mosaic.version = 11 : i64} {
  func.func @_prenorm2_ln_kernel(%arg0: i32, %arg1: memref<32x128xf32, #tpu.memory_space<vmem>>, %arg2: memref<32x128xf32, #tpu.memory_space<vmem>>, %arg3: memref<1x128xf32, #tpu.memory_space<vmem>>, %arg4: memref<1x128xf32, #tpu.memory_space<vmem>>, %arg5: memref<32x128xf32, #tpu.memory_space<vmem>>, %arg6: memref<32x128xf32, #tpu.memory_space<vmem>>) attributes {dimension_semantics = [#tpu.dimension_semantics<parallel>], iteration_bounds = array<i64: 1>, scalar_prefetch = 0 : i64, scratch_operands = 0 : i64, tpu.core_type = #tpu.core_type<tc>, window_params = [{transform_indices = @transform_0, window_bounds = array<i64: 32, 128>}, {transform_indices = @transform_1, window_bounds = array<i64: 32, 128>}, {pipeline_mode = #tpu.pipeline_mode<synchronous>, transform_indices = @transform_2, window_bounds = array<i64: 1, 128>}, {pipeline_mode = #tpu.pipeline_mode<synchronous>, transform_indices = @transform_3, window_bounds = array<i64: 1, 128>}, {transform_indices = @transform_4, window_bounds = array<i64: 32, 128>}, {transform_indices = @transform_5, window_bounds = array<i64: 32, 128>}]} {
    %c0 = arith.constant 0 : index
    %c0_0 = arith.constant 0 : index
    %0 = vector.load %arg3[%c0, %c0_0] : memref<1x128xf32, #tpu.memory_space<vmem>>, vector<1x128xf32>
    %c0_1 = arith.constant 0 : index
    %c0_2 = arith.constant 0 : index
    %1 = vector.load %arg4[%c0_1, %c0_2] : memref<1x128xf32, #tpu.memory_space<vmem>>, vector<1x128xf32>
    %c0_3 = arith.constant 0 : index
    %c0_4 = arith.constant 0 : index
    %2 = vector.load %arg1[%c0_3, %c0_4] : memref<32x128xf32, #tpu.memory_space<vmem>>, vector<32x128xf32>
    %cst = arith.constant dense<0.000000e+00> : vector<32xf32>
    %3 = vector.multi_reduction <add>, %2, %cst [1] : vector<32x128xf32> to vector<32xf32>
    %4 = vector.shape_cast %3 : vector<32xf32> to vector<32x1xf32>
    %cst_5 = arith.constant 7.812500e-03 : f32
    %5 = vector.broadcast %cst_5 : f32 to vector<32x1xf32>
    %6 = arith.mulf %4, %5 : vector<32x1xf32>
    %7 = vector.broadcast %6 : vector<32x1xf32> to vector<32x128xf32>
    %8 = arith.subf %2, %7 : vector<32x128xf32>
    %9 = arith.mulf %8, %8 : vector<32x128xf32>
    %cst_6 = arith.constant dense<0.000000e+00> : vector<32xf32>
    %10 = vector.multi_reduction <add>, %9, %cst_6 [1] : vector<32x128xf32> to vector<32xf32>
    %11 = vector.shape_cast %10 : vector<32xf32> to vector<32x1xf32>
    %cst_7 = arith.constant 7.812500e-03 : f32
    %12 = vector.broadcast %cst_7 : f32 to vector<32x1xf32>
    %13 = arith.mulf %11, %12 : vector<32x1xf32>
    %cst_8 = arith.constant 9.99999974E-6 : f32
    %14 = vector.broadcast %cst_8 : f32 to vector<32x1xf32>
    %15 = arith.addf %13, %14 : vector<32x1xf32>
    %16 = math.rsqrt %15 : vector<32x1xf32>
    %17 = vector.broadcast %16 : vector<32x1xf32> to vector<32x128xf32>
    %18 = arith.mulf %8, %17 : vector<32x128xf32>
    %19 = vector.broadcast %0 : vector<1x128xf32> to vector<32x128xf32>
    %20 = arith.mulf %18, %19 : vector<32x128xf32>
    %21 = vector.broadcast %1 : vector<1x128xf32> to vector<32x128xf32>
    %22 = arith.addf %20, %21 : vector<32x128xf32>
    %c0_9 = arith.constant 0 : index
    %c0_10 = arith.constant 0 : index
    %23 = vector.load %arg5[%c0_9, %c0_10] : memref<32x128xf32, #tpu.memory_space<vmem>>, vector<32x128xf32>
    tpu.vector_store %arg5[%c0_9, %c0_10], %22 {strides = array<i32>} : memref<32x128xf32, #tpu.memory_space<vmem>>, vector<32x128xf32>,
    %c0_11 = arith.constant 0 : index
    %c0_12 = arith.constant 0 : index
    %24 = vector.load %arg2[%c0_11, %c0_12] : memref<32x128xf32, #tpu.memory_space<vmem>>, vector<32x128xf32>
    %cst_13 = arith.constant dense<0.000000e+00> : vector<32xf32>
    %25 = vector.multi_reduction <add>, %24, %cst_13 [1] : vector<32x128xf32> to vector<32xf32>
    %26 = vector.shape_cast %25 : vector<32xf32> to vector<32x1xf32>
    %cst_14 = arith.constant 7.812500e-03 : f32
    %27 = vector.broadcast %cst_14 : f32 to vector<32x1xf32>
    %28 = arith.mulf %26, %27 : vector<32x1xf32>
    %29 = vector.broadcast %28 : vector<32x1xf32> to vector<32x128xf32>
    %30 = arith.subf %24, %29 : vector<32x128xf32>
    %31 = arith.mulf %30, %30 : vector<32x128xf32>
    %cst_15 = arith.constant dense<0.000000e+00> : vector<32xf32>
    %32 = vector.multi_reduction <add>, %31, %cst_15 [1] : vector<32x128xf32> to vector<32xf32>
    %33 = vector.shape_cast %32 : vector<32xf32> to vector<32x1xf32>
    %cst_16 = arith.constant 7.812500e-03 : f32
    %34 = vector.broadcast %cst_16 : f32 to vector<32x1xf32>
    %35 = arith.mulf %33, %34 : vector<32x1xf32>
    %cst_17 = arith.constant 9.99999974E-6 : f32
    %36 = vector.broadcast %cst_17 : f32 to vector<32x1xf32>
    %37 = arith.addf %35, %36 : vector<32x1xf32>
    %38 = math.rsqrt %37 : vector<32x1xf32>
    %39 = vector.broadcast %38 : vector<32x1xf32> to vector<32x128xf32>
    %40 = arith.mulf %30, %39 : vector<32x128xf32>
    %41 = vector.broadcast %0 : vector<1x128xf32> to vector<32x128xf32>
    %42 = arith.mulf %40, %41 : vector<32x128xf32>
    %43 = vector.broadcast %1 : vector<1x128xf32> to vector<32x128xf32>
    %44 = arith.addf %42, %43 : vector<32x128xf32>
    %c0_18 = arith.constant 0 : index
    %c0_19 = arith.constant 0 : index
    %45 = vector.load %arg6[%c0_18, %c0_19] : memref<32x128xf32, #tpu.memory_space<vmem>>, vector<32x128xf32>
    tpu.vector_store %arg6[%c0_18, %c0_19], %44 {strides = array<i32>} : memref<32x128xf32, #tpu.memory_space<vmem>>, vector<32x128xf32>,
    return
  }
  func.func @transform_0(%arg0: i32) -> (i32, i32) {
    %c0_i32 = arith.constant 0 : i32
    %c0_i32_0 = arith.constant 0 : i32
    return %arg0, %c0_i32 : i32, i32
  }
  func.func @transform_1(%arg0: i32) -> (i32, i32) {
    %c0_i32 = arith.constant 0 : i32
    %c0_i32_0 = arith.constant 0 : i32
    return %arg0, %c0_i32 : i32, i32
  }
  func.func @transform_2(%arg0: i32) -> (i32, i32) {
    %c0_i32 = arith.constant 0 : i32
    %c0_i32_0 = arith.constant 0 : i32
    %c0_i32_1 = arith.constant 0 : i32
    return %c0_i32, %c0_i32_0 : i32, i32
  }
  func.func @transform_3(%arg0: i32) -> (i32, i32) {
    %c0_i32 = arith.constant 0 : i32
    %c0_i32_0 = arith.constant 0 : i32
    %c0_i32_1 = arith.constant 0 : i32
    return %c0_i32, %c0_i32_0 : i32, i32
  }
  func.func @transform_4(%arg0: i32) -> (i32, i32) {
    %c0_i32 = arith.constant 0 : i32
    %c0_i32_0 = arith.constant 0 : i32
    return %arg0, %c0_i32 : i32, i32
  }
  func.func @transform_5(%arg0: i32) -> (i32, i32) {
    %c0_i32 = arith.constant 0 : i32
    %c0_i32_0 = arith.constant 0 : i32
    return %arg0, %c0_i32 : i32, i32
  }
}

</mosaic_0001>

<bundles_post_ra>
// kernel: tpu_custom_call.1
= control target key start
LH: loop header
LB: loop body
LE: loop exit
PB: predicated region body
PF: predicated region fallthrough
CT: control target
= control target key end

     0   :  { %11 = vsyncpa [#allocation3], 0  ;;  %s586_s0 = inlined_call_operand.hbm [shape: f32[32,128], index: 0, kind: input, shape index: {}]   ;;  %s587_s1 = inlined_call_operand.hbm [shape: f32[32,128], index: 1, kind: input, shape index: {}]   ;;  %s588_s2 = inlined_call_operand.vmem [shape: f32[1,128], index: 2, kind: input, shape index: {}]   ;;  %s589_s3 = inlined_call_operand.vmem [shape: f32[1,128], index: 3, kind: input, shape index: {}]   ;;  %s590_s4 = inlined_call_operand.hbm [shape: f32[32,128], index: 4, kind: output, shape index: {0}]   ;;  %s591_s5 = inlined_call_operand.hbm [shape: f32[32,128], index: 5, kind: output, shape index: {1}]  }
   0x1   :  { %12 = vsyncpa [#allocation6], 0 }
   0x2   :  { %13 = vsyncpa [#allocation4], 0 }
   0x3   :  { %14 = vsyncpa [#allocation9], 0  ;;  %s19_s20 = sshll.u32 %s586_s0, 4  ;;  %s419_s21 = smov [#allocation2]   ;;  %s20_s20 = int_to_ptr.hbm [resolvable:$true] %s19_s20 }
   0x4   :  { %s21_s22 = sshll.u32 %s419_s21, 4  ;;  %s32_s25 = sshll.u32 %s587_s1, 4  ;;  %s22_s22 = int_to_ptr.vmem [resolvable:$true] %s21_s22  ;;  %s33_s25 = int_to_ptr.hbm [resolvable:$true] %s32_s25 }
   0x5   :  { %s420_s26 = smov 128   ;;  %s421_s27 = smov 8  }
   0x6   :  { %27 = dma.hbm_to_vmem [thread:$0]  %s20_s20, 512, %s22_s22, [#allocation3], %s420_s26, %s420_s26, %s421_s27  }
   0x7   :  { %s422_s28 = smov [#allocation5]  }
   0x8   :  { %s34_s29 = sshll.u32 %s422_s28, 4  ;;  %s35_s29 = int_to_ptr.vmem [resolvable:$true] %s34_s29 }
   0x9   :  { %40 = dma.hbm_to_vmem [thread:$0]  %s33_s25, 512, %s35_s29, [#allocation6], %s420_s26, %s420_s26, %s421_s27  }
   0xa   :  { %411 = dma.done.wait [#allocation3], 512  }
   0xb   :  { %412 = vsyncadd [#allocation3], 4294966784 }
   0xc   :  { %413 = dma.done.wait [#allocation6], 512  }
   0xd   :  { %414 = vsyncadd [#allocation6], 4294966784  ;;  %v157_v0 = vld [vmem:[#allocation5] sm:$0xff]  ;;  %v57_v1 = vld [vmem:[#allocation2 + $0x10] sm:$0xff]  ;;  %s259_s9 = sshll.u32 %s590_s4, 4  ;;  %s424_s4 = smov [#allocation8]   ;;  %s260_s9 = int_to_ptr.hbm [resolvable:$true] %s259_s9 }
   0xe   :  { %v55_v2 = vld [vmem:[#allocation2] sm:$0xff]  ;;  %161 = vadd.xlane.f32.xlu2 %v157_v0  ;;  %63 = vadd.xlane.f32.xlu1 %v57_v1  ;;  %v158_v3 = vld [vmem:[#allocation5 + $0x8] sm:$0xff]  ;;  %v58_v4 = vld [vmem:[#allocation2 + $0x18] sm:$0xff]  ;;  %s270_s10 = sshll.u32 %s424_s4, 4  ;;  %s272_s13 = sshll.u32 %s591_s5, 4  ;;  %s271_s10 = int_to_ptr.vmem [resolvable:$true] %s270_s10  ;;  %s273_s13 = int_to_ptr.hbm [resolvable:$true] %s272_s13 }
   0xf   :  { %59 = vadd.xlane.f32.xlu0 %v55_v2  ;;  %v56_v5 = vld [vmem:[#allocation2 + $0x8] sm:$0xff]  ;;  %v160_v6 = vld [vmem:[#allocation5 + $0x18] sm:$0xff]  ;;  %v159_v7 = vld [vmem:[#allocation5 + $0x10] sm:$0xff] }
  0x16   :  { %163 = vadd.xlane.f32.xlu2 %v158_v3  ;;  %65 = vadd.xlane.f32.xlu1 %v58_v4 }
  0x17   :  { %61 = vadd.xlane.f32.xlu0 %v56_v5 }
  0x1e   :  { %167 = vadd.xlane.f32.xlu1 %v160_v6 }
  0x1f   :  { %165 = vadd.xlane.f32.xlu0 %v159_v7 }
  0x81   :  { %v162_v8 = vpop.xlane.xlu2 %161  ;;  %v64_v9 = vpop.xlane.xlu1 %63 }
  0x82   :  { %v69_v10 = vmul.f32 0.0078125, %v64_v9  ;;  %v60_v11 = vpop.xlane.xlu0 %59  ;;  %v169_v25 = vmul.f32 0.0078125, %v162_v8 }
  0x83   :  { %v67_v12 = vmul.f32 0.0078125, %v60_v11  ;;  %v511_v11 = vld [vmem:[%s588_s2] ss:$0 sm:$0xff]  ;;  %s423_s2 = smov [#allocation7]  }
  0x84   :  { %v467_v13 = vsub.f32 %v57_v1, %v69_v10  ;;  %v487_v30 = vsub.f32 %v157_v0, %v169_v25 }
  0x85   :  { %v469_v14 = vsub.f32 %v55_v2, %v67_v12 }
  0x86   :  { %v77_v15 = vmul.f32 %v467_v13, %v467_v13  ;;  %v177_v35 = vmul.f32 %v487_v30, %v487_v30 }
  0x87   :  { %v75_v16 = vmul.f32 %v469_v14, %v469_v14 }
  0x88   :  { %83 = vadd.xlane.f32.xlu1 %v77_v15 }
  0x89   :  { %79 = vadd.xlane.f32.xlu2 %v75_v16  ;;  %v164_v17 = vpop.xlane.xlu2 %163  ;;  %v66_v18 = vpop.xlane.xlu1 %65 }
  0x8a   :  { %v170_v19 = vmul.f32 0.0078125, %v164_v17  ;;  %v70_v20 = vmul.f32 0.0078125, %v66_v18  ;;  %v62_v21 = vpop.xlane.xlu0 %61 }
  0x8b   :  { %v68_v22 = vmul.f32 0.0078125, %v62_v21 }
  0x8c   :  { %v475_v23 = vsub.f32 %v158_v3, %v170_v19  ;;  %v477_v24 = vsub.f32 %v58_v4, %v70_v20 }
  0x8d   :  { %v479_v26 = vsub.f32 %v56_v5, %v68_v22  ;;  %v521_v22 = vld [vmem:[%s589_s3] ss:$0 sm:$0xff]  ;;  %s552_s3 = sshll.u32 %s423_s2, 4  ;;  %s258_s3 = int_to_ptr.vmem [resolvable:$true] %s552_s3 }
  0x8e   :  { %v178_v27 = vmul.f32 %v475_v23, %v475_v23  ;;  %v78_v28 = vmul.f32 %v477_v24, %v477_v24 }
  0x8f   :  { %v76_v29 = vmul.f32 %v479_v26, %v479_v26 }
  0x90   :  { %183 = vadd.xlane.f32.xlu1 %v178_v27 }
  0x91   :  { %85 = vadd.xlane.f32.xlu2 %v78_v28  ;;  %81 = vadd.xlane.f32.xlu0 %v76_v29  ;;  %v168_v32 = vpop.xlane.xlu1 %167 }
  0x92   :  { %v166_v31 = vpop.xlane.xlu0 %165  ;;  %v172_v36 = vmul.f32 0.0078125, %v168_v32 }
  0x93   :  { %v171_v33 = vmul.f32 0.0078125, %v166_v31 }
  0x94   :  { %v495_v38 = vsub.f32 %v160_v6, %v172_v36 }
  0x95   :  { %v489_v34 = vsub.f32 %v159_v7, %v171_v33 }
  0x96   :  { %v180_v39 = vmul.f32 %v495_v38, %v495_v38 }
  0x97   :  { %v179_v37 = vmul.f32 %v489_v34, %v489_v34 }
  0x99   :  { %181 = vadd.xlane.f32.xlu0 %v177_v35  ;;  %185 = vadd.xlane.f32.xlu2 %v179_v37 }
  0xa1   :  { %187 = vadd.xlane.f32.xlu0 %v180_v39 }
  0xfb   :  { %v84_v40 = vpop.xlane.xlu1 %83 }
  0xfc   :  { %v89_v41 = vmul.f32 0.0078125, %v84_v40  ;;  %v80_v42 = vpop.xlane.xlu2 %79 }
  0xfd   :  { %v87_v43 = vmul.f32 0.0078125, %v80_v42 }
  0xfe   :  { %v93_v44 = vadd.f32 1e-05, %v89_v41 }
  0xff   :  { %v91_v45 = vadd.f32 1e-05, %v87_v43 }
 0x100   :  { %299 = vrsqrt.f32 %v93_v44  ;;  %vm121_vm0 = vweird.f32 %v93_v44 }
 0x101   :  { %301 = vrsqrt.f32 %v91_v45  ;;  %vm101_vm4 = vweird.f32 %v91_v45 }
 0x103   :  { %v184_v46 = vpop.xlane.xlu1 %183 }
 0x104   :  { %v190_v47 = vmul.f32 0.0078125, %v184_v46  ;;  %v86_v48 = vpop.xlane.xlu2 %85  ;;  %v82_v49 = vpop.xlane.xlu0 %81 }
 0x105   :  { %v90_v50 = vmul.f32 0.0078125, %v86_v48  ;;  %v88_v51 = vmul.f32 0.0078125, %v82_v49 }
 0x106   :  { %v300_v52 = vpop.eup %299  ;;  %v194_v53 = vadd.f32 1e-05, %v190_v47 }
 0x107   :  { %v302_v54 = vpop.eup %301  ;;  %v116_v55 = vmul.f32 %v300_v52, %v93_v44  ;;  %v499_v56 = vadd.f32 1e-05, %v90_v50  ;;  %v501_v57 = vadd.f32 1e-05, %v88_v51  ;;  %vm122_vm1 = vweird.f32 %v300_v52 }
 0x108   :  { %v96_v58 = vmul.f32 %v302_v54, %v91_v45  ;;  %303 = vrsqrt.f32 %v194_v53  ;;  %vm102_vm2 = vweird.f32 %v302_v54  ;;  %vm123_vm3 = vmor %vm121_vm0, %vm122_vm1  ;;  %vm213_vm6 = vweird.f32 %v194_v53 }
 0x109   :  { %v117_v59 = vmul.f32 %v300_v52, %v116_v55  ;;  %305 = vrsqrt.f32 %v499_v56  ;;  %vm103_vm5 = vmor %vm101_vm4, %vm102_vm2  ;;  %vm131_vm8 = vweird.f32 %v499_v56  ;;  %vm111_vm13 = vweird.f32 %v501_v57 }
 0x10a   :  { %v97_v60 = vmul.f32 %v302_v54, %v96_v58  ;;  %307 = vrsqrt.f32 %v501_v57 }
 0x10b   :  { %v118_v61 = vmul.f32 0.5, %v117_v59 }
 0x10c   :  { %v98_v62 = vmul.f32 0.5, %v97_v60  ;;  %v186_v63 = vpop.xlane.xlu2 %185  ;;  %v182_v0 = vpop.xlane.xlu0 %181 }
 0x10d   :  { %v119_v1 = vsub.f32 1.5, %v118_v61  ;;  %v191_v2 = vmul.f32 0.0078125, %v186_v63  ;;  %v189_v3 = vmul.f32 0.0078125, %v182_v0 }
 0x10e   :  { %v304_v4 = vpop.eup %303  ;;  %v99_v5 = vsub.f32 1.5, %v98_v62 }
 0x10f   :  { %v306_v6 = vpop.eup %305  ;;  %v120_v7 = vmul.f32 %v300_v52, %v119_v1  ;;  %v208_v8 = vmul.f32 %v304_v4, %v194_v53  ;;  %v505_v9 = vadd.f32 1e-05, %v191_v2  ;;  %v514_v16 = vadd.f32 1e-05, %v189_v3 }
 0x110   :  { %v308_v10 = vpop.eup %307  ;;  %v100_v12 = vmul.f32 %v302_v54, %v99_v5  ;;  %v126_v15 = vmul.f32 %v306_v6, %v499_v56  ;;  %vm214_vm7 = vweird.f32 %v304_v4  ;;  %vm132_vm10 = vweird.f32 %v306_v6 }
 0x111   :  { %v124_v17 = vsel %vm123_vm3, %v300_v52, %v120_v7  ;;  %v209_v18 = vmul.f32 %v304_v4, %v208_v8  ;;  %v106_v19 = vmul.f32 %v308_v10, %v501_v57  ;;  %309 = vrsqrt.f32 %v505_v9  ;;  %vm530_vm9 = vmor %vm213_vm6, %vm214_vm7 }
 0x112   :  { %v137_v20 = vmul.f32 %v124_v17, %v467_v13  ;;  %v104_v21 = vsel %vm103_vm5, %v302_v54, %v100_v12  ;;  %v127_v25 = vmul.f32 %v306_v6, %v126_v15  ;;  %311 = vrsqrt.f32 %v514_v16  ;;  %vm133_vm12 = vmor %vm131_vm8, %vm132_vm10 }
 0x113   :  { %v135_v27 = vmul.f32 %v104_v21, %v469_v14  ;;  %v210_v28 = vmul.f32 0.5, %v209_v18  ;;  %v107_v29 = vmul.f32 %v308_v10, %v106_v19  ;;  %vm112_vm11 = vweird.f32 %v308_v10 }
 0x114   :  { %v144_v31 = vmul.f32 %v511_v11, %v137_v20  ;;  %v128_v32 = vmul.f32 0.5, %v127_v25  ;;  %v188_v13 = vpop.xlane.xlu0 %187  ;;  %vm113_vm14 = vmor %vm111_vm13, %vm112_vm11  ;;  %vm223_vm15 = vweird.f32 %v505_v9  ;;  %vm203_vm3 = vweird.f32 %v514_v16 }
 0x115   :  { %v142_v33 = vmul.f32 %v511_v11, %v135_v27  ;;  %v211_v35 = vsub.f32 1.5, %v210_v28  ;;  %v108_v36 = vmul.f32 0.5, %v107_v29  ;;  %v192_v37 = vmul.f32 0.0078125, %v188_v13 }
 0x116   :  { %v129_v14 = vsub.f32 1.5, %v128_v32  ;;  %v151_v40 = vadd.f32 %v521_v22, %v144_v31 }
 0x117   :  { %v212_v41 = vmul.f32 %v304_v4, %v211_v35  ;;  %v109_v42 = vsub.f32 1.5, %v108_v36  ;;  %v535_v43 = vadd.f32 1e-05, %v192_v37  ;;  %v149_v44 = vadd.f32 %v521_v22, %v142_v33  ;;  %v310_v45 = vpop.eup %309 }
 0x118   :  { %v130_v46 = vmul.f32 %v306_v6, %v129_v14  ;;  %155 = vst [vmem:[#allocation7 + $0x10] sm:$0xff] %v151_v40  ;;  %v218_v49 = vmul.f32 %v310_v45, %v505_v9  ;;  %v312_v50 = vpop.eup %311  ;;  %vm224_vm0 = vweird.f32 %v310_v45 }
 0x119   :  { %v216_v47 = vsel %vm530_vm9, %v304_v4, %v212_v41  ;;  %v110_v48 = vmul.f32 %v308_v10, %v109_v42  ;;  %153 = vst [vmem:[#allocation7] sm:$0xff] %v149_v44  ;;  %313 = vrsqrt.f32 %v535_v43  ;;  %v198_v56 = vmul.f32 %v312_v50, %v514_v16  ;;  %vm225_vm2 = vmor %vm223_vm15, %vm224_vm0 }
 0x11a   :  { %v238_v51 = vmul.f32 %v216_v47, %v475_v23  ;;  %v134_v52 = vsel %vm133_vm12, %v306_v6, %v130_v46  ;;  %v219_v55 = vmul.f32 %v310_v45, %v218_v49  ;;  %vm204_vm1 = vweird.f32 %v312_v50 }
 0x11b   :  { %v138_v53 = vmul.f32 %v134_v52, %v477_v24  ;;  %v114_v54 = vsel %vm113_vm14, %v308_v10, %v110_v48  ;;  %v199_v61 = vmul.f32 %v312_v50, %v198_v56  ;;  %vm205_vm4 = vmor %vm203_vm3, %vm204_vm1  ;;  %vm233_vm6 = vweird.f32 %v535_v43 }
 0x11c   :  { %v242_v58 = vmul.f32 %v511_v11, %v238_v51  ;;  %v136_v57 = vmul.f32 %v114_v54, %v479_v26  ;;  %v220_v60 = vmul.f32 0.5, %v219_v55 }
 0x11d   :  { %v145_v59 = vmul.f32 %v511_v11, %v138_v53  ;;  %v200_v26 = vmul.f32 0.5, %v199_v61 }
 0x11e   :  { %v246_v23 = vadd.f32 %v521_v22, %v242_v58  ;;  %v143_v24 = vmul.f32 %v511_v11, %v136_v57  ;;  %v221_v62 = vsub.f32 1.5, %v220_v60 }
 0x11f   :  { %v152_v63 = vadd.f32 %v521_v22, %v145_v59  ;;  %v314_v0 = vpop.eup %313  ;;  %v201_v3 = vsub.f32 1.5, %v200_v26 }
 0x120   :  { %250 = vst [vmem:[#allocation8 + $0x8] sm:$0xff] %v246_v23  ;;  %v150_v1 = vadd.f32 %v521_v22, %v143_v24  ;;  %v222_v2 = vmul.f32 %v310_v45, %v221_v62  ;;  %v228_v4 = vmul.f32 %v314_v0, %v535_v43  ;;  %vm234_vm5 = vweird.f32 %v314_v0 }
 0x121   :  { %156 = vst [vmem:[#allocation7 + $0x18] sm:$0xff] %v152_v63  ;;  %v202_v6 = vmul.f32 %v312_v50, %v201_v3  ;;  %vm235_vm7 = vmor %vm233_vm6, %vm234_vm5 }
 0x122   :  { %154 = vst [vmem:[#allocation7 + $0x8] sm:$0xff] %v150_v1  ;;  %v226_v5 = vsel %vm225_vm2, %v310_v45, %v222_v2  ;;  %v229_v7 = vmul.f32 %v314_v0, %v228_v4 }
 0x123   :  { %265 = dma.vmem_to_hbm [thread:$0]  %s258_s3, 512, %s260_s9, [#allocation4], %s420_s26, %s420_s26, %s421_s27   ;;  %v239_v8 = vmul.f32 %v226_v5, %v489_v34  ;;  %v206_v10 = vsel %vm205_vm4, %v312_v50, %v202_v6 }
 0x124   :  { %v230_v12 = vmul.f32 0.5, %v229_v7  ;;  %v237_v9 = vmul.f32 %v206_v10, %v487_v30 }
 0x125   :  { %v243_v15 = vmul.f32 %v511_v11, %v239_v8 }
 0x126   :  { %v231_v17 = vsub.f32 1.5, %v230_v12  ;;  %v241_v16 = vmul.f32 %v511_v11, %v237_v9 }
 0x127   :  { %v247_v18 = vadd.f32 %v521_v22, %v243_v15 }
 0x128   :  { %v232_v19 = vmul.f32 %v314_v0, %v231_v17  ;;  %v245_v34 = vadd.f32 %v521_v22, %v241_v16 }
 0x129   :  { %251 = vst [vmem:[#allocation8 + $0x10] sm:$0xff] %v247_v18 }
 0x12a   :  { %v236_v20 = vsel %vm235_vm7, %v314_v0, %v232_v19  ;;  %249 = vst [vmem:[#allocation8] sm:$0xff] %v245_v34 }
 0x12b   :  { %v240_v21 = vmul.f32 %v236_v20, %v495_v38 }
 0x12d   :  { %v244_v30 = vmul.f32 %v511_v11, %v240_v21 }
 0x12f   :  { %v248_v25 = vadd.f32 %v521_v22, %v244_v30 }
 0x131   :  { %252 = vst [vmem:[#allocation8 + $0x18] sm:$0xff] %v248_v25 }
 0x132   :  { %278 = dma.vmem_to_hbm [thread:$0]  %s271_s10, 512, %s273_s13, [#allocation9], %s420_s26, %s420_s26, %s421_s27  }
 0x133   :  { %415 = dma.done.wait [#allocation4], 512  }
 0x134   :  { %416 = vsyncadd [#allocation4], 4294966784 }
 0x135   :  { %417 = dma.done.wait [#allocation9], 512  }
 0x136   :  { %418 = vsyncadd [#allocation9], 4294966784 }
 0x137   :  { %287 = vsyncpa [#allocation3], 1 }
 0x138   :  { %288 = vsyncpa [#allocation6], 1 }
 0x139   :  { %289 = vsyncpa [#allocation4], 1 }
 0x13a   :  { %290 = vsyncpa [#allocation9], 1 }

</bundles_post_ra>
